<compile_context>
chip_gen: v7x
topology: tpu7x:2x2x1
jax: 0.10.0
libtpu: 0.0.40
codegen_flags: <defaults>
</compile_context>

<pallas_src>
import functools

import jax
import jax.numpy as jnp
from jax.experimental import pallas as pl
from jax.experimental.pallas import tpu as pltpu


def _round_up(x, m):
    return ((x + m - 1) // m) * m


def regression_head_kernel(x_ref, w1_ref, b1_ref, w2_ref, b2_ref, o_ref, *, op_dtype):
    # x_ref: (TB, H) in the input dtype; w1_ref: (H, H) op_dtype; b1_ref: (1, H) f32;
    # w2_ref: (H, Lp) op_dtype; b2_ref: (1, Lp) f32; o_ref: (TB, Lp).
    # dropout (inference mode) = identity.
    x = x_ref[...].astype(op_dtype)

    # dense: x @ W1 with f32 accumulation on the MXU; f32 bias + tanh epilogue.
    h = jnp.dot(x, w1_ref[...], preferred_element_type=jnp.float32)
    h = jnp.tanh(h + b1_ref[...])

    # dropout (inference mode) = identity.
    # out_proj: h @ W2 (lane-padded to Lp columns) + b2, all accumulated in f32.
    h = h.astype(op_dtype)
    y = jnp.dot(h, w2_ref[...], preferred_element_type=jnp.float32)
    o_ref[...] = (y + b2_ref[...]).astype(o_ref.dtype)


@functools.lru_cache(maxsize=None)
def _single_buffer_supported():
    """One-time feature probe: can grid-invariant inputs use pl.Buffered(1)?

    This is the only place a broad except is allowed — it is a capability probe,
    not a call-time fallback, so real lowering/VMEM errors in the actual kernel
    still surface to the caller.
    """
    try:
        spec = pl.BlockSpec((8, 128), lambda i: (0, 0), pipeline_mode=pl.Buffered(1))
    except TypeError:
        return False

    def probe(a_ref, o_ref):
        o_ref[...] = a_ref[...]

    try:
        fn = pl.pallas_call(
            probe,
            out_shape=jax.ShapeDtypeStruct((8, 128), jnp.float32),
            grid=(2,),
            in_specs=[spec],
            out_specs=pl.BlockSpec((8, 128), lambda i: (0, 0)),
        )
        jax.jit(fn).lower(jax.ShapeDtypeStruct((8, 128), jnp.float32)).compile()
        return True
    except Exception:
        return False


def prepare_regression_head_params(w_dense, b_dense, w_out, b_out,
                                   compute_dtype=jnp.bfloat16):
    """Cast/pad parameters once; cache the result for repeated inference."""
    H = w_dense.shape[0]
    L = w_out.shape[1]
    op_dtype = jnp.dtype(compute_dtype)
    Lp = _round_up(max(L, 128), 128)          # lane-dense output width

    w1 = w_dense.astype(op_dtype)                                     # (H, H)
    w2 = jnp.pad(w_out, ((0, 0), (0, Lp - L))).astype(op_dtype)       # (H, Lp)
    b1 = b_dense.reshape(1, H).astype(jnp.float32)                    # (1, H)
    b2 = jnp.pad(b_out.reshape(1, L), ((0, 0), (0, Lp - L))).astype(jnp.float32)
    return (w1, b1, w2, b2), L


def regression_head_apply(x, params, num_labels, *, tile_b=None):
    """x: (B, H).  params from prepare_regression_head_params.  Returns (B, L)."""
    w1, b1, w2, b2 = params
    B, H = x.shape
    Lp = w2.shape[1]
    L = num_labels
    op_dtype = w1.dtype
    out_dtype = x.dtype

    sublane = 16 if jnp.dtype(out_dtype).itemsize == 2 else 8

    # Batch tile: sublane-aligned, capped at 512 rows (amortizes ~0.35us/step
    # grid overhead).  If the whole batch fits in one step, split it in two so
    # 2-TC chips (v7x) can shard the "parallel" batch axis.
    if tile_b is None:
        tile_b = min(512, _round_up(B, sublane))
        if B > sublane and pl.cdiv(B, tile_b) < 2:
            tile_b = _round_up(pl.cdiv(B, 2), sublane)
    tile_b = max(sublane, _round_up(tile_b, sublane))

    grid = (pl.cdiv(B, tile_b),)
    single_buffer = _single_buffer_supported()

    def const_spec(shape):
        # Grid-invariant operands: single-buffer to reclaim VMEM when supported.
        if single_buffer:
            return pl.BlockSpec(shape, lambda i: (0, 0), pipeline_mode=pl.Buffered(1))
        return pl.BlockSpec(shape, lambda i: (0, 0))

    # Explicit scoped-VMEM budget: resident weights (x1 or x2 buffers) +
    # double-buffered x/out tiles + f32 temporaries, with generous headroom.
    wi = jnp.dtype(op_dtype).itemsize
    xi = jnp.dtype(x.dtype).itemsize
    oi = jnp.dtype(out_dtype).itemsize
    weight_bytes = (H * H + H * Lp) * wi + (H + Lp) * 4
    weight_bufs = 1 if single_buffer else 2
    stream_bytes = 2 * tile_b * (H * xi + Lp * oi)
    scratch_bytes = tile_b * (2 * H + 2 * Lp) * 4
    needed = weight_bytes * weight_bufs + stream_bytes + scratch_bytes
    vmem_limit = int(min(64 << 20, max(16 << 20, 2 * needed + (4 << 20))))

    cost = pl.CostEstimate(
        flops=2 * B * H * H + 2 * B * H * Lp,
        transcendentals=B * H,
        bytes_accessed=(B * H * xi                 # x
                        + H * H * wi               # dense weight
                        + H * Lp * wi              # out_proj weight (lane-padded)
                        + (H + Lp) * 4             # biases (f32)
                        + B * Lp * oi),            # output
    )

    kernel = functools.partial(regression_head_kernel, op_dtype=op_dtype)

    y = pl.pallas_call(
        kernel,
        out_shape=jax.ShapeDtypeStruct((B, Lp), out_dtype),
        grid_spec=pltpu.PrefetchScalarGridSpec(
            num_scalar_prefetch=0,
            grid=grid,
            in_specs=[
                pl.BlockSpec((tile_b, H), lambda i: (i, 0)),   # x tile over batch
                const_spec((H, H)),                            # dense weight (resident)
                const_spec((1, H)),                            # dense bias
                const_spec((H, Lp)),                           # out_proj weight (lane-padded)
                const_spec((1, Lp)),                           # out_proj bias
            ],
            out_specs=pl.BlockSpec((tile_b, Lp), lambda i: (i, 0)),
        ),
        compiler_params=pltpu.CompilerParams(
            dimension_semantics=("parallel",),
            vmem_limit_bytes=vmem_limit,
        ),
        cost_estimate=cost,
    )(x, w1, b1, w2, b2)

    return y[:, :L]


def regression_head(x, w_dense, b_dense, w_out, b_out, *,
                    tile_b=None, compute_dtype=jnp.bfloat16):
    """Forward pass of RegressionHead (dropout = identity, inference mode).

    x: (B, H).  w_dense: (H, H) [in, out].  b_dense: (H,).
    w_out: (H, L) [in, out].  b_out: (L,).  Returns (B, L) in x.dtype.
    compute_dtype: MXU operand dtype (bf16 default; f32 accumulate/epilogue).
    """
    params, L = prepare_regression_head_params(
        w_dense, b_dense, w_out, b_out, compute_dtype=compute_dtype)
    return regression_head_apply(x, params, L, tile_b=tile_b)


def regression_head_ref(x, w_dense, b_dense, w_out, b_out):
    h = jnp.tanh(x @ w_dense + b_dense)
    return h @ w_out + b_out


if __name__ == "__main__":
    # Small, deterministic shapes consistent with the module's forward:
    # features: (batch, hidden_size); num_labels outputs.
    B, H, L = 8, 32, 3

    key = jax.random.PRNGKey(0)
    kx, kw1, kb1, kw2, kb2 = jax.random.split(key, 5)

    x = jax.random.normal(kx, (B, H), dtype=jnp.float32)
    # Deterministic "init" of parameters (shapes from nn.Linear in __init__),
    # stored as (in, out) so the kernel does x @ W + b.
    w_dense = jax.random.normal(kw1, (H, H), dtype=jnp.float32) * 0.05
    b_dense = jax.random.normal(kb1, (H,), dtype=jnp.float32) * 0.01
    w_out = jax.random.normal(kw2, (H, L), dtype=jnp.float32) * 0.05
    b_out = jax.random.normal(kb2, (L,), dtype=jnp.float32) * 0.01

    y_ref = regression_head_ref(x, w_dense, b_dense, w_out, b_out)

    # Exact f32 MXU-operand path: tight tolerance vs reference.
    y_f32 = jax.block_until_ready(
        regression_head(x, w_dense, b_dense, w_out, b_out,
                        compute_dtype=jnp.float32))
    assert y_f32.shape == (B, L)
    assert jnp.allclose(y_f32, y_ref, atol=1e-5, rtol=1e-5), "f32 mismatch vs reference"

    # Default bf16 MXU-operand path (f32 accumulate + epilogue): looser tolerance.
    y_bf16 = jax.block_until_ready(regression_head(x, w_dense, b_dense, w_out, b_out))
    assert y_bf16.shape == (B, L)
    assert jnp.allclose(y_bf16, y_ref, atol=3e-2, rtol=3e-2), "bf16 mismatch vs reference"

    # Ragged batch (not a sublane multiple, >1 grid step) exercises the masked
    # last block without any wrapper-side padding.
    x2 = jax.random.normal(kx, (12, H), dtype=jnp.float32)
    y2 = jax.block_until_ready(
        regression_head(x2, w_dense, b_dense, w_out, b_out,
                        compute_dtype=jnp.float32))
    y2_ref = regression_head_ref(x2, w_dense, b_dense, w_out, b_out)
    assert y2.shape == (12, L)
    assert jnp.allclose(y2, y2_ref, atol=1e-5, rtol=1e-5), "ragged-batch mismatch"

    print("KERNEL_OK")
</pallas_src>

<mosaic_0001>
module attributes {stable_mosaic.version = 11 : i64} {
  func.func @regression_head_kernel(%arg0: i32, %arg1: memref<8x32xf32, #tpu.memory_space<vmem>>, %arg2: memref<32x32xf32, #tpu.memory_space<vmem>>, %arg3: memref<1x32xf32, #tpu.memory_space<vmem>>, %arg4: memref<32x128xf32, #tpu.memory_space<vmem>>, %arg5: memref<1x128xf32, #tpu.memory_space<vmem>>, %arg6: memref<8x128xf32, #tpu.memory_space<vmem>>) attributes {dimension_semantics = [#tpu.dimension_semantics<parallel>], iteration_bounds = array<i64: 1>, scalar_prefetch = 0 : i64, scratch_operands = 0 : i64, tpu.core_type = #tpu.core_type<tc>, window_params = [{transform_indices = @transform_0, window_bounds = array<i64: 8, 32>}, {pipeline_mode = #tpu.pipeline_mode<synchronous>, transform_indices = @transform_1, window_bounds = array<i64: 32, 32>}, {pipeline_mode = #tpu.pipeline_mode<synchronous>, transform_indices = @transform_2, window_bounds = array<i64: 1, 32>}, {pipeline_mode = #tpu.pipeline_mode<synchronous>, transform_indices = @transform_3, window_bounds = array<i64: 32, 128>}, {pipeline_mode = #tpu.pipeline_mode<synchronous>, transform_indices = @transform_4, window_bounds = array<i64: 1, 128>}, {transform_indices = @transform_5, window_bounds = array<i64: 8, 128>}]} {
    %c0 = arith.constant 0 : index
    %c0_0 = arith.constant 0 : index
    %0 = vector.load %arg1[%c0, %c0_0] : memref<8x32xf32, #tpu.memory_space<vmem>>, vector<8x32xf32>
    %c0_1 = arith.constant 0 : index
    %c0_2 = arith.constant 0 : index
    %1 = vector.load %arg2[%c0_1, %c0_2] : memref<32x32xf32, #tpu.memory_space<vmem>>, vector<32x32xf32>
    %cst = arith.constant dense<0.000000e+00> : vector<8x32xf32>
    %2 = tpu.matmul %0, %1, %cst {dimension_numbers = #tpu.dot_dimension_numbers<[1], [0], [0], [1], [0, 0, 1, 1], [], []>} : vector<8x32xf32>, vector<32x32xf32>, vector<8x32xf32> -> vector<8x32xf32>
    %c0_3 = arith.constant 0 : index
    %c0_4 = arith.constant 0 : index
    %3 = vector.load %arg3[%c0_3, %c0_4] : memref<1x32xf32, #tpu.memory_space<vmem>>, vector<1x32xf32>
    %4 = vector.broadcast %3 : vector<1x32xf32> to vector<8x32xf32>
    %5 = arith.addf %2, %4 : vector<8x32xf32>
    %6 = math.tanh %5 : vector<8x32xf32>
    %c0_5 = arith.constant 0 : index
    %c0_6 = arith.constant 0 : index
    %7 = vector.load %arg4[%c0_5, %c0_6] : memref<32x128xf32, #tpu.memory_space<vmem>>, vector<32x128xf32>
    %cst_7 = arith.constant dense<0.000000e+00> : vector<8x128xf32>
    %8 = tpu.matmul %6, %7, %cst_7 {dimension_numbers = #tpu.dot_dimension_numbers<[1], [0], [0], [1], [0, 0, 1, 1], [], []>} : vector<8x32xf32>, vector<32x128xf32>, vector<8x128xf32> -> vector<8x128xf32>
    %c0_8 = arith.constant 0 : index
    %c0_9 = arith.constant 0 : index
    %9 = vector.load %arg5[%c0_8, %c0_9] : memref<1x128xf32, #tpu.memory_space<vmem>>, vector<1x128xf32>
    %10 = vector.broadcast %9 : vector<1x128xf32> to vector<8x128xf32>
    %11 = arith.addf %8, %10 : vector<8x128xf32>
    %c0_10 = arith.constant 0 : index
    %c0_11 = arith.constant 0 : index
    %12 = vector.load %arg6[%c0_10, %c0_11] : memref<8x128xf32, #tpu.memory_space<vmem>>, vector<8x128xf32>
    tpu.vector_store %arg6[%c0_10, %c0_11], %11 {strides = array<i32>} : memref<8x128xf32, #tpu.memory_space<vmem>>, vector<8x128xf32>,
    return
  }
  func.func @transform_0(%arg0: i32) -> (i32, i32) {
    %c0_i32 = arith.constant 0 : i32
    %c0_i32_0 = arith.constant 0 : i32
    return %arg0, %c0_i32 : i32, i32
  }
  func.func @transform_1(%arg0: i32) -> (i32, i32) {
    %c0_i32 = arith.constant 0 : i32
    %c0_i32_0 = arith.constant 0 : i32
    %c0_i32_1 = arith.constant 0 : i32
    return %c0_i32, %c0_i32_0 : i32, i32
  }
  func.func @transform_2(%arg0: i32) -> (i32, i32) {
    %c0_i32 = arith.constant 0 : i32
    %c0_i32_0 = arith.constant 0 : i32
    %c0_i32_1 = arith.constant 0 : i32
    return %c0_i32, %c0_i32_0 : i32, i32
  }
  func.func @transform_3(%arg0: i32) -> (i32, i32) {
    %c0_i32 = arith.constant 0 : i32
    %c0_i32_0 = arith.constant 0 : i32
    %c0_i32_1 = arith.constant 0 : i32
    return %c0_i32, %c0_i32_0 : i32, i32
  }
  func.func @transform_4(%arg0: i32) -> (i32, i32) {
    %c0_i32 = arith.constant 0 : i32
    %c0_i32_0 = arith.constant 0 : i32
    %c0_i32_1 = arith.constant 0 : i32
    return %c0_i32, %c0_i32_0 : i32, i32
  }
  func.func @transform_5(%arg0: i32) -> (i32, i32) {
    %c0_i32 = arith.constant 0 : i32
    %c0_i32_0 = arith.constant 0 : i32
    return %arg0, %c0_i32 : i32, i32
  }
}

</mosaic_0001>

<bundles_post_ra>
// kernel: tpu_custom_call.1
= control target key start
LH: loop header
LB: loop body
LE: loop exit
PB: predicated region body
PF: predicated region fallthrough
CT: control target
= control target key end

     0   :  { %10 = vsyncpa [#allocation3], 0  ;;  %s502_s0 = inlined_call_operand.hbm [shape: f32[8,32], index: 0, kind: input, shape index: {}]   ;;  %s503_s1 = inlined_call_operand.hbm [shape: f32[32,32], index: 1, kind: input, shape index: {}]   ;;  %s504_s2 = inlined_call_operand.vmem [shape: f32[1,32], index: 2, kind: input, shape index: {}]   ;;  %s505_s3 = inlined_call_operand.hbm [shape: f32[32,128], index: 3, kind: input, shape index: {}]   ;;  %s506_s4 = inlined_call_operand.vmem [shape: f32[1,128], index: 4, kind: input, shape index: {}]   ;;  %s507_s5 = inlined_call_operand.hbm [shape: f32[8,128], index: 5, kind: output, shape index: {}]  }
   0x1   :  { %11 = vsyncpa [#allocation6], 0 }
   0x2   :  { %12 = vsyncpa [#allocation4], 0  ;;  %s401_s18 = smov [#allocation5]   ;;  %s307_s22 = scalar_lea.hbm %s503_s1, 512 }
   0x3   :  { %s28_s19 = sshll.u32 %s401_s18, 4  ;;  %p308_p0 = scmp.ne.s32.totalorder %s503_s1, %s307_s22  ;;  %s29_s19 = int_to_ptr.vmem [resolvable:$true] %s28_s19 }
   0x4   :  { %p311_p1 = scmp.lt.u32.totalorder %s307_s22, %s503_s1 }
   0x6   :  { %p313_p2 = pnand %p311_p1, %p308_p0 }
   0x8   :  { %316 = shalt.err (!%p313_p2)
}
   0x9   :  { %s317_s27 = scalar_lea.vmem %s29_s19, 512  ;;  %p322_p4 = scmp.lt.s32.totalorder %s29_s19, %s29_s19 }
   0xa   :  { %p318_p3 = scmp.ne.s32.totalorder %s29_s19, %s317_s27  ;;  %p323_p5 = scmp.lt.s32.totalorder %s317_s27, %s317_s27 }
   0xc   :  { %p324_p6 = por %p323_p5, %p322_p4 }
   0xe   :  { %p325_p7 = pnand %p324_p6, %p318_p3 }
  0x10   :  { %328 = shalt.err (!%p325_p7)
}
  0x11   :  { %s402_s28 = smov 128   ;;  %s403_s29 = smov 8  }
  0x12   :  { %34 = dma.hbm_to_vmem [thread:$0]  %s503_s1, 512, %s29_s19, [#allocation6], %s402_s28, %s402_s28, %s403_s29  }
  0x13   :  { %s404_s7 = smov [#allocation2]   ;;  %s405_s9 = smov [#allocation7]  }
  0x14   :  { %s19_s8 = sshll.u32 %s404_s7, 4  ;;  %s42_s10 = sshll.u32 %s405_s9, 4  ;;  %s20_s8 = int_to_ptr.vmem [resolvable:$true] %s19_s8  ;;  %s43_s10 = int_to_ptr.vmem [resolvable:$true] %s42_s10 }
  0x15   :  { %s329_s13 = scalar_lea.hbm %s502_s0, 128 }
  0x16   :  { %p330_p8 = scmp.ne.s32.totalorder %s502_s0, %s329_s13  ;;  %p333_p9 = scmp.lt.u32.totalorder %s329_s13, %s502_s0 }
  0x18   :  { %p335_p10 = pnand %p333_p9, %p330_p8 }
  0x1a   :  { %338 = shalt.err (!%p335_p10)
}
  0x1b   :  { %s339_s1 = scalar_lea.vmem %s20_s8, 128  ;;  %p344_p12 = scmp.lt.s32.totalorder %s20_s8, %s20_s8 }
  0x1c   :  { %p340_p11 = scmp.ne.s32.totalorder %s20_s8, %s339_s1  ;;  %p345_p13 = scmp.lt.s32.totalorder %s339_s1, %s339_s1 }
  0x1e   :  { %p346_p0 = por %p345_p13, %p344_p12 }
  0x20   :  { %p347_p1 = pnand %p346_p0, %p340_p11 }
  0x22   :  { %350 = shalt.err (!%p347_p1)
}
  0x23   :  { %22 = dma.hbm_to_vmem [thread:$0]  %s502_s0, 128, %s20_s8, [#allocation3]  }
  0x24   :  { %s351_s22 = scalar_lea.hbm %s505_s3, 512 }
  0x25   :  { %p352_p2 = scmp.ne.s32.totalorder %s505_s3, %s351_s22  ;;  %p355_p3 = scmp.lt.u32.totalorder %s351_s22, %s505_s3 }
  0x27   :  { %p357_p4 = pnand %p355_p3, %p352_p2 }
  0x29   :  { %360 = shalt.err (!%p357_p4)
}
  0x2a   :  { %s361_s27 = scalar_lea.vmem %s43_s10, 512  ;;  %p366_p6 = scmp.lt.s32.totalorder %s43_s10, %s43_s10 }
  0x2b   :  { %p362_p5 = scmp.ne.s32.totalorder %s43_s10, %s361_s27  ;;  %p367_p7 = scmp.lt.s32.totalorder %s361_s27, %s361_s27 }
  0x2d   :  { %p368_p8 = por %p367_p7, %p366_p6 }
  0x2f   :  { %p369_p9 = pnand %p368_p8, %p362_p5 }
  0x31   :  { %372 = shalt.err (!%p369_p9)
}
  0x32   :  { %48 = dma.hbm_to_vmem [thread:$0]  %s505_s3, 512, %s43_s10, [#allocation6], %s402_s28, %s402_s28, %s403_s29  }
  0x33   :  { %395 = dma.done.wait [#allocation3], 128  }
  0x34   :  { %396 = vsyncadd [#allocation3], 4294967168 }
  0x35   :  { %397 = dma.done.wait [#allocation6], 1024  }
  0x36   :  { %398 = vsyncadd [#allocation6], 4294966272  ;;  %v406_v0 = vmov 0.0|0.0   ;;  %vm407_vm0 = vmmov 0   ;;  %v408_v1 = vmov 0.0   ;;  %v61_v2 = vld [vmem:[#allocation5] sm:$0xff] }
  0x37   :  { %284 = vmatprep.subr.bf16.mxu0 %v406_v0  ;;  %270 = vmatprep.mubr.msk.f32.mxu0 %vm407_vm0, %v408_v1  ;;  %v62_v3 = vld [vmem:[#allocation5 + $0x8] sm:$0xff]  ;;  %v63_v4 = vld [vmem:[#allocation5 + $0x10] sm:$0xff]  ;;  %v64_v6 = vld [vmem:[#allocation5 + $0x18] sm:$0xff]  ;;  %vm72_vm1 = vcmask 261120   ;;  %s409_s7 = smov [#allocation8]  }
  0x38   :  { %290 = vmatprep.subr.bf16.mxu1 %v406_v0  ;;  %281 = vmatprep.mubr.msk.f32.mxu1 %vm407_vm0, %v408_v1  ;;  %v285_v5 = vpack.c.bf16 %v62_v3, %v61_v2  ;;  %v288_v7 = vpack.c.bf16 %v64_v6, %v63_v4  ;;  %v60_v8 = vld [vmem:[#allocation2] sm:$0xff]  ;;  %v147_v9 = vld [vmem:[#allocation7] sm:$0xff]  ;;  %v148_v10 = vld [vmem:[#allocation7 + $0x8] sm:$0xff]  ;;  %s238_s8 = sshll.u32 %s409_s7, 4  ;;  %s239_s8 = int_to_ptr.vmem [resolvable:$true] %s238_s8 }
  0x39   :  { %v149_v11 = vld [vmem:[#allocation7 + $0x10] sm:$0xff]  ;;  %v291_v12 = vpack.c.bf16 %v148_v10, %v147_v9  ;;  %v150_v13 = vld [vmem:[#allocation7 + $0x18] sm:$0xff]  ;;  %s373_s9 = scalar_lea.vmem %s239_s8, 128  ;;  %p378_p11 = scmp.lt.s32.totalorder %s239_s8, %s239_s8 }
  0x3a   :  { %286 = vmatpush3.bf16.msra.mxu0 %v285_v5  ;;  %v294_v14 = vpack.c.bf16 %v150_v13, %v149_v11  ;;  %v248_v15 = vld [vmem:[%s504_s2] ss:$0 sm:$0xff]  ;;  %p374_p10 = scmp.ne.s32.totalorder %s239_s8, %s373_s9  ;;  %p379_p12 = scmp.lt.s32.totalorder %s373_s9, %s373_s9 }
  0x3b   :  { %287 = vmatprep.subr.bf16.mxu0 %v406_v0  ;;  %292 = vmatpush3.bf16.msra.mxu1 %v291_v12  ;;  %v250_v20 = vld [vmem:[%s506_s4] ss:$0 sm:$0xff] }
  0x3c   :  { %293 = vmatprep.subr.bf16.mxu1 %v406_v0  ;;  %p380_p13 = por %p379_p12, %p378_p11 }
  0x3e   :  { %289 = vmatpush3.bf16.msra.mxu0 %v288_v7  ;;  %p381_p0 = pnand %p380_p13, %p374_p10 }
  0x3f   :  { %295 = vmatpush3.bf16.msra.mxu1 %v294_v14 }
  0x41   :  { %271 = vmatmul.mubr.msk.f32.vlgmr.msra.gmra.mrb[0].mxu0 %vm72_vm1, %v60_v8 }
 0x114   :  { %v142_v16 = vpop.f32.mrb[0].mxu0 }
 0x115   :  { %v143_v17 = vadd.f32 %v248_v15, %v142_v16  ;;  %v272_v18 = vpop.f32.mrb[1].mxu0 }
 0x117   :  { %305 = vtanh.f32 %v143_v17 }
 0x121   :  { %v306_v19 = vpop.eup %305 }
 0x122   :  { %282 = vmatmul.mubr.msk.f32.vlgmr.msra.gmra.mrb[0].mxu1 %vm72_vm1, %v306_v19 }
 0x1f5   :  { %v227_v21 = vpop.f32.mrb[0].mxu1 }
 0x1f6   :  { %v228_v22 = vadd.f32 %v250_v20, %v227_v21  ;;  %v283_v23 = vpop.f32.mrb[1].mxu1 }
 0x1f8   :  { %231 = vst [vmem:[#allocation8] sm:$0xff] %v228_v22 }
 0x1f9   :  { %384 = shalt.err (!%p381_p0)
}
 0x1fa   :  { %s385_s11 = scalar_lea.hbm %s507_s5, 128 }
 0x1fb   :  { %p386_p1 = scmp.ne.s32.totalorder %s507_s5, %s385_s11  ;;  %p389_p2 = scmp.lt.u32.totalorder %s385_s11, %s507_s5 }
 0x1fd   :  { %p391_p3 = pnand %p389_p2, %p386_p1 }
 0x1ff   :  { %394 = shalt.err (!%p391_p3)
}
 0x200   :  { %241 = dma.vmem_to_hbm [thread:$0]  %s239_s8, 128, %s507_s5, [#allocation4]  }
 0x201   :  { %399 = dma.done.wait [#allocation4], 128  }
 0x202   :  { %400 = vsyncadd [#allocation4], 4294967168 }
 0x203   :  { %245 = vsyncpa [#allocation3], 1 }
 0x204   :  { %246 = vsyncpa [#allocation6], 1 }
 0x205   :  { %247 = vsyncpa [#allocation4], 1 }

</bundles_post_ra>
